<compile_context>
chip_gen: v7x
topology: tpu7x:2x2x1
jax: 0.10.0
libtpu: 0.0.40
codegen_flags: <defaults>
</compile_context>

<pallas_src>
import jax
import jax.numpy as jnp
from jax.experimental import pallas as pl
from jax.experimental.pallas import tpu as pltpu

LANE = 128
_MIB = 1024 * 1024
_MIN_PALLAS_BYTES = 512 * 1024  # below this, XLA's fused add wins


def _device_kind() -> str:
    try:
        return jax.devices()[0].device_kind.lower()
    except Exception:
        return ""


def _default_block_bytes() -> int:
    kind = _device_kind()
    if "v5" in kind:
        return 2 * _MIB   # ~0.8 TB/s HBM: 2 MiB step already <5% overhead
    if "v7" in kind:
        return 6 * _MIB   # ~3.2 TB/s HBM: bigger steps amortize the 0.35 us/step
    return 4 * _MIB       # v6e and unknown: safe under the 32 MiB scoped default


def _num_tc() -> int:
    # v7x has 2 TensorCores behind one device; split the grid so both
    # participate in DMA issue.  Older generations: 1.
    return 2 if "v7" in _device_kind() else 1


def _round_up(x: int, m: int) -> int:
    return ((x + m - 1) // m) * m


def _res_update_kernel(old_ref, new_ref, out_ref):
    # Pure VPU elementwise add on the current VMEM tile.
    out_ref[...] = old_ref[...] + new_ref[...]


def _res_update_2d(old2d, new2d, *, donate_old, block_bytes):
    """Add two lane-dense (rows, 128) slabs with a tiled Pallas kernel."""
    rows = old2d.shape[0]
    itemsize = jnp.dtype(old2d.dtype).itemsize
    # Sublane granularity: 8 rows for 4-byte, 16 for 2-byte, 32 for 1-byte.
    min_rows = max(8, 32 // itemsize)

    # Max rows per block from the per-stream byte budget.
    tile_rows = max(min_rows,
                    (block_bytes // (LANE * itemsize)) // min_rows * min_rows)

    # v7x: ensure >= 2 blocks once the tensor is big enough that splitting
    # pays for the extra grid step, so both TensorCores get work.
    n_tc = _num_tc()
    total_bytes = rows * LANE * itemsize
    if n_tc > 1 and total_bytes >= 1 * _MIB:
        tile_rows = min(tile_rows,
                        max(min_rows, _round_up(pl.cdiv(rows, n_tc), min_rows)))

    # Rebalance: even block sizes instead of k full blocks + a tiny masked tail.
    num_blocks = pl.cdiv(rows, tile_rows)
    tile_rows = max(min_rows, _round_up(pl.cdiv(rows, num_blocks), min_rows))
    if tile_rows >= rows:
        tile_rows = rows  # full-dim block is always layout-legal
    grid = (pl.cdiv(rows, tile_rows),)

    vmem_limit = 48 * _MIB if block_bytes > 4 * _MIB else 32 * _MIB

    spec = pl.BlockSpec((tile_rows, LANE), lambda i: (i, 0))
    return pl.pallas_call(
        _res_update_kernel,
        out_shape=jax.ShapeDtypeStruct((rows, LANE), old2d.dtype),
        grid_spec=pltpu.PrefetchScalarGridSpec(
            num_scalar_prefetch=0,
            grid=grid,
            in_specs=[spec, spec],
            out_specs=spec,
        ),
        compiler_params=pltpu.CompilerParams(
            dimension_semantics=("parallel",),
            vmem_limit_bytes=vmem_limit,
        ),
        cost_estimate=pl.CostEstimate(
            flops=rows * LANE,
            transcendentals=0,
            bytes_accessed=3 * rows * LANE * itemsize,
        ),
        input_output_aliases=({0: 0} if donate_old else {}),
    )(old2d, new2d)


def res_update(old: jax.Array, new: jax.Array, *,
               donate_old: bool = False,
               block_bytes: int | None = None,
               min_pallas_bytes: int = _MIN_PALLAS_BYTES) -> jax.Array:
    """Pallas implementation of ResUpdate.forward: old + new."""
    assert old.shape == new.shape, "ResUpdate requires matching shapes"
    assert old.dtype == new.dtype

    orig_shape = old.shape
    n = old.size
    itemsize = jnp.dtype(old.dtype).itemsize

    # Tiny tensors and ragged (non-multiple-of-128) sizes: plain XLA add.
    # It fuses with neighbours and avoids launch overhead / extra HBM passes.
    if n == 0 or n % LANE != 0 or n * itemsize < min_pallas_bytes:
        return old + new

    if block_bytes is None:
        block_bytes = _default_block_bytes()

    rows = n // LANE  # zero-copy lane-dense view
    out2d = _res_update_2d(old.reshape(rows, LANE), new.reshape(rows, LANE),
                           donate_old=donate_old, block_bytes=block_bytes)
    return out2d.reshape(orig_shape)


if __name__ == "__main__":
    # ResUpdate has no parameters, so nothing to initialize.
    key = jax.random.PRNGKey(0)
    k_old, k_new = jax.random.split(key)

    # Small NCHW-style per-atom feature tensor (batch=2, channels=4, 16x16).
    shape = (2, 4, 16, 16)
    old = jax.random.normal(k_old, shape, dtype=jnp.float32)
    new = jax.random.normal(k_new, shape, dtype=jnp.float32)
    ref = old + new

    # 1) Default dispatch on a tiny tensor: XLA fallback (no Pallas launch).
    out = jax.block_until_ready(res_update(old, new))
    assert out.shape == ref.shape and out.dtype == ref.dtype
    assert jnp.allclose(out, ref, atol=1e-6, rtol=1e-6)

    # 2) Force the Pallas aligned path on the same small tensor.
    out_p = jax.block_until_ready(res_update(old, new, min_pallas_bytes=0))
    assert jnp.allclose(out_p, ref, atol=1e-6, rtol=1e-6)

    # 3) Multi-block path with rebalanced tiles and a masked partial block.
    shape2 = (2, 4, 40, 16)  # rows=40, tile budget 16 -> grid=(3,)
    o2 = jax.random.normal(k_old, shape2, dtype=jnp.float32)
    n2 = jax.random.normal(k_new, shape2, dtype=jnp.float32)
    out2 = jax.block_until_ready(
        res_update(o2, n2, block_bytes=16 * LANE * 4, min_pallas_bytes=0))
    assert jnp.allclose(out2, o2 + n2, atol=1e-6, rtol=1e-6)

    # 4) Moderately sized tensor through the default (chip-tuned) block size.
    shape3 = (1024, 1024)  # 4 MiB f32, aligned
    o3 = jax.random.normal(k_old, shape3, dtype=jnp.float32)
    n3 = jax.random.normal(k_new, shape3, dtype=jnp.float32)
    out3 = jax.block_until_ready(res_update(o3, n3))
    assert jnp.allclose(out3, o3 + n3, atol=1e-6, rtol=1e-6)

    # 5) Ragged size (not a multiple of 128): XLA fallback.
    shape4 = (9, 115)
    o4 = jax.random.normal(k_old, shape4, dtype=jnp.float32)
    n4 = jax.random.normal(k_new, shape4, dtype=jnp.float32)
    out4 = jax.block_until_ready(res_update(o4, n4))
    assert jnp.allclose(out4, o4 + n4, atol=1e-6, rtol=1e-6)

    # 6) bf16 path (sublane granularity 16, full-dim block).
    o5 = jax.random.normal(k_old, (4, 8, 32), dtype=jnp.bfloat16)
    n5 = jax.random.normal(k_new, (4, 8, 32), dtype=jnp.bfloat16)
    out5 = jax.block_until_ready(res_update(o5, n5, min_pallas_bytes=0))
    assert jnp.allclose(out5.astype(jnp.float32), (o5 + n5).astype(jnp.float32),
                        atol=1e-2, rtol=1e-2)

    # 7) In-place residual update: donate `old` so the output aliases its buffer
    #    (aligned path only).
    donated_fn = jax.jit(
        lambda a, b: res_update(a, b, donate_old=True, min_pallas_bytes=0),
        donate_argnums=(0,))
    donated = jax.block_until_ready(donated_fn(old, new))  # `old` invalid after
    assert jnp.allclose(donated, ref, atol=1e-6, rtol=1e-6)

    print("KERNEL_OK")
</pallas_src>

<mosaic_0001>
module attributes {stable_mosaic.version = 11 : i64} {
  func.func @_res_update_kernel(%arg0: i32, %arg1: memref<16x128xf32, #tpu.memory_space<vmem>>, %arg2: memref<16x128xf32, #tpu.memory_space<vmem>>, %arg3: memref<16x128xf32, #tpu.memory_space<vmem>>) attributes {dimension_semantics = [#tpu.dimension_semantics<parallel>], iteration_bounds = array<i64: 1>, scalar_prefetch = 0 : i64, scratch_operands = 0 : i64, tpu.core_type = #tpu.core_type<tc>, window_params = [{transform_indices = @transform_0, window_bounds = array<i64: 16, 128>}, {transform_indices = @transform_1, window_bounds = array<i64: 16, 128>}, {transform_indices = @transform_2, window_bounds = array<i64: 16, 128>}]} {
    %c0 = arith.constant 0 : index
    %c0_0 = arith.constant 0 : index
    %0 = vector.load %arg1[%c0, %c0_0] : memref<16x128xf32, #tpu.memory_space<vmem>>, vector<16x128xf32>
    %c0_1 = arith.constant 0 : index
    %c0_2 = arith.constant 0 : index
    %1 = vector.load %arg2[%c0_1, %c0_2] : memref<16x128xf32, #tpu.memory_space<vmem>>, vector<16x128xf32>
    %2 = arith.addf %0, %1 : vector<16x128xf32>
    %c0_3 = arith.constant 0 : index
    %c0_4 = arith.constant 0 : index
    %3 = vector.load %arg3[%c0_3, %c0_4] : memref<16x128xf32, #tpu.memory_space<vmem>>, vector<16x128xf32>
    tpu.vector_store %arg3[%c0_3, %c0_4], %2 {strides = array<i32>} : memref<16x128xf32, #tpu.memory_space<vmem>>, vector<16x128xf32>,
    return
  }
  func.func @transform_0(%arg0: i32) -> (i32, i32) {
    %c0_i32 = arith.constant 0 : i32
    %c0_i32_0 = arith.constant 0 : i32
    return %arg0, %c0_i32 : i32, i32
  }
  func.func @transform_1(%arg0: i32) -> (i32, i32) {
    %c0_i32 = arith.constant 0 : i32
    %c0_i32_0 = arith.constant 0 : i32
    return %arg0, %c0_i32 : i32, i32
  }
  func.func @transform_2(%arg0: i32) -> (i32, i32) {
    %c0_i32 = arith.constant 0 : i32
    %c0_i32_0 = arith.constant 0 : i32
    return %arg0, %c0_i32 : i32, i32
  }
}

</mosaic_0001>

<bundles_post_ra>
// kernel: tpu_custom_call.1
= control target key start
LH: loop header
LB: loop body
LE: loop exit
PB: predicated region body
PF: predicated region fallthrough
CT: control target
= control target key end

     0   :  { %7 = vsyncpa [#allocation3], 0  ;;  %s208_s0 = inlined_call_operand.hbm [shape: f32[16,128], index: 0, kind: input, shape index: {}]   ;;  %s209_s1 = inlined_call_operand.hbm [shape: f32[16,128], index: 1, kind: input, shape index: {}]   ;;  %s210_s2 = inlined_call_operand.hbm [shape: f32[16,128], index: 2, kind: output, shape index: {}]  }
   0x1   :  { %8 = vsyncpa [#allocation6], 0 }
   0x2   :  { %9 = vsyncpa [#allocation4], 0  ;;  %s143_s9 = smov [#allocation2]   ;;  %s71_s13 = scalar_lea.hbm %s208_s0, 256 }
   0x3   :  { %s15_s10 = sshll.u32 %s143_s9, 4  ;;  %p72_p0 = scmp.ne.s32.totalorder %s208_s0, %s71_s13  ;;  %s16_s10 = int_to_ptr.vmem [resolvable:$true] %s15_s10 }
   0x4   :  { %p75_p1 = scmp.lt.u32.totalorder %s71_s13, %s208_s0 }
   0x6   :  { %p77_p2 = pnand %p75_p1, %p72_p0 }
   0x8   :  { %80 = shalt.err (!%p77_p2)
}
   0x9   :  { %s81_s18 = scalar_lea.vmem %s16_s10, 256  ;;  %p86_p4 = scmp.lt.s32.totalorder %s16_s10, %s16_s10 }
   0xa   :  { %p82_p3 = scmp.ne.s32.totalorder %s16_s10, %s81_s18  ;;  %p87_p5 = scmp.lt.s32.totalorder %s81_s18, %s81_s18 }
   0xc   :  { %p88_p6 = por %p87_p5, %p86_p4 }
   0xe   :  { %p89_p7 = pnand %p88_p6, %p82_p3 }
  0x10   :  { %92 = shalt.err (!%p89_p7)
}
  0x11   :  { %s144_s19 = smov 128   ;;  %s145_s20 = smov 8  }
  0x12   :  { %21 = dma.hbm_to_vmem [thread:$0]  %s208_s0, 256, %s16_s10, [#allocation3], %s144_s19, %s144_s19, %s145_s20  }
  0x13   :  { %s146_s23 = smov [#allocation5]   ;;  %s93_s27 = scalar_lea.hbm %s209_s1, 256 }
  0x14   :  { %s27_s24 = sshll.u32 %s146_s23, 4  ;;  %p94_p8 = scmp.ne.s32.totalorder %s209_s1, %s93_s27  ;;  %s28_s24 = int_to_ptr.vmem [resolvable:$true] %s27_s24 }
  0x15   :  { %p97_p9 = scmp.lt.u32.totalorder %s93_s27, %s209_s1 }
  0x17   :  { %p99_p10 = pnand %p97_p9, %p94_p8 }
  0x19   :  { %102 = shalt.err (!%p99_p10)
}
  0x1a   :  { %s103_s4 = scalar_lea.vmem %s28_s24, 256  ;;  %p108_p12 = scmp.lt.s32.totalorder %s28_s24, %s28_s24 }
  0x1b   :  { %p104_p11 = scmp.ne.s32.totalorder %s28_s24, %s103_s4  ;;  %p109_p13 = scmp.lt.s32.totalorder %s103_s4, %s103_s4 }
  0x1d   :  { %p110_p0 = por %p109_p13, %p108_p12 }
  0x1f   :  { %p111_p1 = pnand %p110_p0, %p104_p11 }
  0x21   :  { %114 = shalt.err (!%p111_p1)
}
  0x22   :  { %33 = dma.hbm_to_vmem [thread:$0]  %s209_s1, 256, %s28_s24, [#allocation6], %s144_s19, %s144_s19, %s145_s20  }
  0x23   :  { %137 = dma.done.wait [#allocation3], 256  }
  0x24   :  { %138 = vsyncadd [#allocation3], 4294967040 }
  0x25   :  { %139 = dma.done.wait [#allocation6], 256  }
  0x26   :  { %140 = vsyncadd [#allocation6], 4294967040  ;;  %s147_s6 = smov [#allocation7]   ;;  %v40_v0 = vld [vmem:[#allocation2] sm:$0xff]  ;;  %v42_v1 = vld [vmem:[#allocation5] sm:$0xff] }
  0x27   :  { %s53_s7 = sshll.u32 %s147_s6, 4  ;;  %v41_v2 = vld [vmem:[#allocation2 + $0x8] sm:$0xff]  ;;  %v44_v3 = vadd.f32 %v42_v1, %v40_v0  ;;  %v43_v4 = vld [vmem:[#allocation5 + $0x8] sm:$0xff]  ;;  %s54_s7 = int_to_ptr.vmem [resolvable:$true] %s53_s7 }
  0x28   :  { %v45_v5 = vadd.f32 %v43_v4, %v41_v2  ;;  %s115_s8 = scalar_lea.vmem %s54_s7, 256  ;;  %p120_p3 = scmp.lt.s32.totalorder %s54_s7, %s54_s7 }
  0x29   :  { %46 = vst [vmem:[#allocation7] sm:$0xff] %v44_v3  ;;  %p116_p2 = scmp.ne.s32.totalorder %s54_s7, %s115_s8  ;;  %p121_p4 = scmp.lt.s32.totalorder %s115_s8, %s115_s8 }
  0x2a   :  { %47 = vst [vmem:[#allocation7 + $0x8] sm:$0xff] %v45_v5 }
  0x2b   :  { %p122_p5 = por %p121_p4, %p120_p3 }
  0x2d   :  { %p123_p6 = pnand %p122_p5, %p116_p2 }
  0x2f   :  { %126 = shalt.err (!%p123_p6)
}
  0x30   :  { %s127_s10 = scalar_lea.hbm %s210_s2, 256 }
  0x31   :  { %p128_p7 = scmp.ne.s32.totalorder %s210_s2, %s127_s10  ;;  %p131_p8 = scmp.lt.u32.totalorder %s127_s10, %s210_s2 }
  0x33   :  { %p133_p9 = pnand %p131_p8, %p128_p7 }
  0x35   :  { %136 = shalt.err (!%p133_p9)
}
  0x36   :  { %59 = dma.vmem_to_hbm [thread:$0]  %s54_s7, 256, %s210_s2, [#allocation4], %s144_s19, %s144_s19, %s145_s20  }
  0x37   :  { %141 = dma.done.wait [#allocation4], 256  }
  0x38   :  { %142 = vsyncadd [#allocation4], 4294967040 }
  0x39   :  { %63 = vsyncpa [#allocation3], 1 }
  0x3a   :  { %64 = vsyncpa [#allocation6], 1 }
  0x3b   :  { %65 = vsyncpa [#allocation4], 1 }

</bundles_post_ra>
